<compile_context>
chip_gen: v5e
topology: v5e:2x2
jax: 0.10.0
libtpu: 0.0.40
codegen_flags: <defaults>
</compile_context>

<pallas_src>
import functools

import jax
import jax.numpy as jnp
from jax.experimental import pallas as pl
from jax.experimental.pallas import tpu as pltpu


def _round_up(x: int, m: int) -> int:
    return ((x + m - 1) // m) * m


def _pick_tile(dim: int, max_tile: int, align: int) -> int:
    """Largest multiple of `align` that divides `dim` and is <= max_tile."""
    best = align
    t = align
    limit = min(max_tile, dim)
    while t <= limit:
        if dim % t == 0:
            best = t
        t += align
    return best


# ----------------------------------------------------------------------------
# Kernels
# ----------------------------------------------------------------------------

def _linear_small_kernel(x_ref, w_ref, b_ref, o_ref):
    # Full K and N in one block; grid only over M.
    o_ref[...] = (
        jnp.dot(x_ref[...], w_ref[...], preferred_element_type=jnp.float32)
        + b_ref[...]
    ).astype(o_ref.dtype)


def _linear_tiled_kernel(x_ref, w_ref, b_ref, o_ref):
    # x_ref: (tm, tk), w_ref: (tk, tn), b_ref: (1, tn), o_ref: (tm, tn) f32.
    # The output block is resident across the K grid axis, so accumulate
    # directly into it (no separate VMEM accumulator needed).
    k = pl.program_id(2)

    @pl.when(k == 0)
    def _init():
        o_ref[...] = jnp.zeros_like(o_ref)

    o_ref[...] += jnp.dot(
        x_ref[...], w_ref[...], preferred_element_type=jnp.float32
    )

    @pl.when(k == pl.num_programs(2) - 1)
    def _finalize():
        o_ref[...] += b_ref[...]  # bias added exactly once


# ----------------------------------------------------------------------------
# Forward wrappers
# ----------------------------------------------------------------------------

@jax.jit
def _forward_small(x, w_kn, b):
    """x:(batch,K) @ w_kn:(K,N) + b:(1,N); K,N unpadded (full-dim blocks)."""
    batch, in_dim = x.shape
    K, N = w_kn.shape  # == (in_dim, out_dim)
    x_f = x.astype(jnp.float32)

    M = _round_up(batch, 8)
    if M != batch:
        x_f = jnp.pad(x_f, ((0, M - batch), (0, 0)))

    tm = _pick_tile(M, 512, 8)
    # v7x has 2 TensorCores: make sure the parallel axis has >= 2 blocks
    # when the batch is big enough to split.
    if M // tm < 2 and M >= 16:
        tm = _pick_tile(M, max(8, M // 2), 8)

    grid = (M // tm,)

    out = pl.pallas_call(
        _linear_small_kernel,
        out_shape=jax.ShapeDtypeStruct((M, N), jnp.float32),
        grid_spec=pltpu.PrefetchScalarGridSpec(
            num_scalar_prefetch=0,
            grid=grid,
            in_specs=[
                pl.BlockSpec((tm, K), lambda i: (i, 0)),   # x M-tile, full K
                pl.BlockSpec((K, N), lambda i: (0, 0)),    # whole weight
                pl.BlockSpec((1, N), lambda i: (0, 0)),    # whole bias
            ],
            out_specs=pl.BlockSpec((tm, N), lambda i: (i, 0)),
        ),
        compiler_params=pltpu.CompilerParams(
            dimension_semantics=("parallel",),
        ),
        cost_estimate=pl.CostEstimate(
            flops=2 * M * N * K,
            transcendentals=0,
            bytes_accessed=4 * (M * K + K * N + M * N + N),
        ),
    )(x_f, w_kn, b)

    if M != batch:
        out = out[:batch]
    return out


@functools.partial(jax.jit, static_argnames=("out_dim",))
def _forward_tiled(x, w_kn, b, *, out_dim):
    """Tiled (M, N, K) matmul; w_kn/b are pre-transposed & 128-padded once."""
    batch, in_dim = x.shape
    K, N = w_kn.shape  # 128-aligned (padded at parameter-init time)
    x_f = x.astype(jnp.float32)

    # Only the reduction dim genuinely needs zero padding; M is rounded to the
    # sublane multiple (8), never to a whole tile.
    M = _round_up(batch, 8)
    pad_m = M - batch
    pad_k = K - in_dim
    if pad_m or pad_k:
        x_f = jnp.pad(x_f, ((0, pad_m), (0, pad_k)))

    # Tiles: large (up to 512/512/1024 f32) but exact divisors of M/N/K.
    tm = _pick_tile(M, 512, 8)
    tn = _pick_tile(N, 512, 128)
    tk = _pick_tile(K, 1024, 128)
    # v7x megacore: guarantee >= 2 parallel blocks when the batch allows it.
    if (M // tm) * (N // tn) < 2 and M >= 16:
        tm = _pick_tile(M, max(8, M // 2), 8)

    grid = (M // tm, N // tn, K // tk)

    # Double-buffered input tiles + output block, x2 headroom; keep the scoped
    # limit between 32 MiB (above v5e's 16 MiB default) and 64 MiB (v7x VMEM).
    dbuf_bytes = 4 * (2 * (tm * tk + tk * tn) + 2 * tm * tn)
    vmem_limit = int(min(max(2 * dbuf_bytes, 32 << 20), 64 << 20))

    out = pl.pallas_call(
        _linear_tiled_kernel,
        out_shape=jax.ShapeDtypeStruct((M, N), jnp.float32),
        grid_spec=pltpu.PrefetchScalarGridSpec(
            num_scalar_prefetch=0,
            grid=grid,
            in_specs=[
                pl.BlockSpec((tm, tk), lambda i, j, k: (i, k)),  # x tile
                pl.BlockSpec((tk, tn), lambda i, j, k: (k, j)),  # W^T tile
                pl.BlockSpec((1, tn), lambda i, j, k: (0, j)),   # bias tile
            ],
            out_specs=pl.BlockSpec((tm, tn), lambda i, j, k: (i, j)),
        ),
        compiler_params=pltpu.CompilerParams(
            dimension_semantics=("parallel", "parallel", "arbitrary"),
            vmem_limit_bytes=vmem_limit,
        ),
        cost_estimate=pl.CostEstimate(
            flops=2 * M * N * K,
            transcendentals=0,
            bytes_accessed=4 * (M * K * (N // tn) + K * N * (M // tm) + M * N + N),
        ),
    )(x_f, w_kn, b)

    if (M, N) != (batch, out_dim):
        out = out[:batch, :out_dim]
    return out


class LinearRegressionPallas:
    """Pallas TPU equivalent of torch.nn.Linear(input_dim, output_dim).

    The weight is transposed to (K, N) and (for the tiled path) zero-padded to
    128-multiples exactly once, at construction time, so the per-call forward
    never re-layouts the weight in HBM.
    """

    # Use the tiled (M, N, K) path once K or N reaches a full MXU-sized tile;
    # below that the single-K/N-block path avoids all K/N zero padding.
    _TILED_THRESHOLD = 256

    def __init__(self, weight, bias):
        out_dim, in_dim = weight.shape
        self.in_dim = int(in_dim)
        self.out_dim = int(out_dim)

        w_kn = jnp.asarray(weight, jnp.float32).T          # (K, N), once
        b = jnp.asarray(bias, jnp.float32).reshape(1, out_dim)

        self.tiled = (self.in_dim >= self._TILED_THRESHOLD
                      or self.out_dim >= self._TILED_THRESHOLD)
        if self.tiled:
            K = _round_up(self.in_dim, 128)
            N = _round_up(self.out_dim, 128)
            if (K, N) != (self.in_dim, self.out_dim):
                w_kn = jnp.pad(
                    w_kn, ((0, K - self.in_dim), (0, N - self.out_dim)))
            if N != self.out_dim:
                b = jnp.pad(b, ((0, 0), (0, N - self.out_dim)))

        self.w_kn = w_kn
        self.b = b

    def __call__(self, x):
        if self.tiled:
            return _forward_tiled(x, self.w_kn, self.b, out_dim=self.out_dim)
        return _forward_small(x, self.w_kn, self.b)


# ----------------------------------------------------------------------------
# Demo / correctness check
# ----------------------------------------------------------------------------

if __name__ == "__main__":
    key = jax.random.PRNGKey(0)

    # --- case 1: the module's nominal small shapes (small-path kernel) ------
    batch, input_dim, output_dim = 8, 32, 16
    k1, k2, k3, key = jax.random.split(key, 4)
    x = jax.random.normal(k1, (batch, input_dim), dtype=jnp.float32)
    bound = 1.0 / jnp.sqrt(jnp.float32(input_dim))
    weight = jax.random.uniform(
        k2, (output_dim, input_dim), jnp.float32, minval=-bound, maxval=bound)
    bias = jax.random.uniform(
        k3, (output_dim,), jnp.float32, minval=-bound, maxval=bound)

    model = LinearRegressionPallas(weight, bias)
    out = jax.block_until_ready(model(x))
    ref = x @ weight.T + bias
    assert out.shape == (batch, output_dim)
    assert jnp.allclose(out, ref, atol=1e-5, rtol=1e-5)

    # --- case 2: larger dims to exercise the tiled (M, N, K) path -----------
    batch2, input_dim2, output_dim2 = 32, 384, 256
    k1, k2, k3, key = jax.random.split(key, 4)
    x2 = jax.random.normal(k1, (batch2, input_dim2), dtype=jnp.float32)
    bound2 = 1.0 / jnp.sqrt(jnp.float32(input_dim2))
    weight2 = jax.random.uniform(
        k2, (output_dim2, input_dim2), jnp.float32, minval=-bound2, maxval=bound2)
    bias2 = jax.random.uniform(
        k3, (output_dim2,), jnp.float32, minval=-bound2, maxval=bound2)

    model2 = LinearRegressionPallas(weight2, bias2)
    out2 = jax.block_until_ready(model2(x2))
    ref2 = x2 @ weight2.T + bias2
    assert out2.shape == (batch2, output_dim2)
    assert jnp.allclose(out2, ref2, atol=1e-4, rtol=1e-4)

    print("KERNEL_OK")
</pallas_src>

<mosaic_0001>
module attributes {stable_mosaic.version = 11 : i64} {
  func.func @_linear_small_kernel(%arg0: i32, %arg1: memref<8x32xf32, #tpu.memory_space<vmem>>, %arg2: memref<32x16xf32, #tpu.memory_space<vmem>>, %arg3: memref<1x16xf32, #tpu.memory_space<vmem>>, %arg4: memref<8x16xf32, #tpu.memory_space<vmem>>) attributes {dimension_semantics = [#tpu.dimension_semantics<parallel>], iteration_bounds = array<i64: 1>, scalar_prefetch = 0 : i64, scratch_operands = 0 : i64, tpu.core_type = #tpu.core_type<tc>, window_params = [{transform_indices = @transform_0, window_bounds = array<i64: 8, 32>}, {pipeline_mode = #tpu.pipeline_mode<synchronous>, transform_indices = @transform_1, window_bounds = array<i64: 32, 16>}, {pipeline_mode = #tpu.pipeline_mode<synchronous>, transform_indices = @transform_2, window_bounds = array<i64: 1, 16>}, {transform_indices = @transform_3, window_bounds = array<i64: 8, 16>}]} {
    %c0 = arith.constant 0 : index
    %c0_0 = arith.constant 0 : index
    %0 = vector.load %arg1[%c0, %c0_0] : memref<8x32xf32, #tpu.memory_space<vmem>>, vector<8x32xf32>
    %c0_1 = arith.constant 0 : index
    %c0_2 = arith.constant 0 : index
    %1 = vector.load %arg2[%c0_1, %c0_2] : memref<32x16xf32, #tpu.memory_space<vmem>>, vector<32x16xf32>
    %cst = arith.constant dense<0.000000e+00> : vector<8x16xf32>
    %2 = tpu.matmul %0, %1, %cst {dimension_numbers = #tpu.dot_dimension_numbers<[1], [0], [0], [1], [0, 0, 1, 1], [], []>} : vector<8x32xf32>, vector<32x16xf32>, vector<8x16xf32> -> vector<8x16xf32>
    %c0_3 = arith.constant 0 : index
    %c0_4 = arith.constant 0 : index
    %3 = vector.load %arg3[%c0_3, %c0_4] : memref<1x16xf32, #tpu.memory_space<vmem>>, vector<1x16xf32>
    %4 = vector.broadcast %3 : vector<1x16xf32> to vector<8x16xf32>
    %5 = arith.addf %2, %4 : vector<8x16xf32>
    %c0_5 = arith.constant 0 : index
    %c0_6 = arith.constant 0 : index
    %6 = vector.load %arg4[%c0_5, %c0_6] : memref<8x16xf32, #tpu.memory_space<vmem>>, vector<8x16xf32>
    tpu.vector_store %arg4[%c0_5, %c0_6], %5 {strides = array<i32>} : memref<8x16xf32, #tpu.memory_space<vmem>>, vector<8x16xf32>,
    return
  }
  func.func @transform_0(%arg0: i32) -> (i32, i32) {
    %c0_i32 = arith.constant 0 : i32
    %c0_i32_0 = arith.constant 0 : i32
    return %arg0, %c0_i32 : i32, i32
  }
  func.func @transform_1(%arg0: i32) -> (i32, i32) {
    %c0_i32 = arith.constant 0 : i32
    %c0_i32_0 = arith.constant 0 : i32
    %c0_i32_1 = arith.constant 0 : i32
    return %c0_i32, %c0_i32_0 : i32, i32
  }
  func.func @transform_2(%arg0: i32) -> (i32, i32) {
    %c0_i32 = arith.constant 0 : i32
    %c0_i32_0 = arith.constant 0 : i32
    %c0_i32_1 = arith.constant 0 : i32
    return %c0_i32, %c0_i32_0 : i32, i32
  }
  func.func @transform_3(%arg0: i32) -> (i32, i32) {
    %c0_i32 = arith.constant 0 : i32
    %c0_i32_0 = arith.constant 0 : i32
    return %arg0, %c0_i32 : i32, i32
  }
}

</mosaic_0001>

<bundles_post_ra>
// kernel: _forward_small.1
= control target key start
LH: loop header
LB: loop body
LE: loop exit
PB: predicated region body
PF: predicated region fallthrough
CT: control target
= control target key end

     0   :  { %s137_s0 = inlined_call_operand.vmem [shape: f32[8,32], index: 0, kind: input, shape index: {}]   ;;  %s138_s1 = inlined_call_operand.vmem [shape: f32[32,16], index: 1, kind: input, shape index: {}]   ;;  %s139_s2 = inlined_call_operand.vmem [shape: f32[1,16], index: 2, kind: input, shape index: {}]   ;;  %s140_s3 = inlined_call_operand.hbm [shape: f32[8,16], index: 3, kind: output, shape index: {}]  }
   0x1   :  { %v19_v0 = vld [vmem:[%s138_s1 + $0x18] sm:$0xff]  ;;  %v18_v1 = vld [vmem:[%s138_s1 + $0x10] sm:$0xff]  ;;  %v17_v2 = vld [vmem:[%s138_s1 + $0x8] sm:$0xff] }
   0x2   :  { %40 = vmatpush.msra.mxu0 %v19_v0 }
   0x3   :  { %8 = vsyncpa [#allocation3], 0  ;;  %v16_v3 = vld [vmem:[%s138_s1] sm:$0xff]  ;;  %vm24_vm0 = vcmask 261120   ;;  %s95_s24 = smov [#allocation2]   ;;  %s57_s28 = sshll.u32 %s140_s3, 4  ;;  %s58_s28 = int_to_ptr.hbm [resolvable:$true] %s57_s28 }
   0x4   :  { %41 = vmatpush.msra.mxu0 %v18_v1  ;;  %v15_v4 = vld [vmem:[%s137_s0] sm:$0xff]  ;;  %s55_s25 = sshll.u32 %s95_s24, 4  ;;  %vm48_vm1 = vcmask 130048   ;;  %s56_s25 = int_to_ptr.vmem [resolvable:$true] %s55_s25 }
   0x5   :  { %v68_v5 = vld [vmem:[%s139_s2] ss:$0 sm:$0xff] }
   0x6   :  { %42 = vmatpush.msra.mxu0 %v17_v2 }
   0x8   :  { %43 = vmatpush.msra.mxu0 %v16_v3 }
   0x9   :  { %66 = vmatmul.msk.f32.vlgmr.msra.gmra.mxu0 %vm24_vm0, %v15_v4 }
  0x86   :  { %v45_v6 = vpop.f32.mrf.mxu0 }
  0x87   :  { %v46_v7 = vadd.f32 %v68_v5, %v45_v6 }
  0x89   :  { %49 = vst.msk [vmem:[#allocation2] sm:$0xff] %vm48_vm1, %v46_v7 }
  0x8a   :  { %60 = dma.vmem_to_hbm [thread:$0]  %s56_s25, 128, %s58_s28, [#allocation3]  }
  0x8b   :  { %93 = dma.done.wait [#allocation3], 128  }
  0x8c   :  { %94 = vsyncadd [#allocation3], 4294967168 }
  0x8d   :  { %65 = vsyncpa [#allocation3], 1 }

</bundles_post_ra>
